<compile_context>
chip_gen: v7x
topology: tpu7x:2x2x1
jax: 0.10.0
libtpu: 0.0.40
codegen_flags: <defaults>
</compile_context>

<pallas_src>
import functools

import jax
import jax.numpy as jnp
import numpy as np
from jax import lax
from jax.experimental import pallas as pl
from jax.experimental.pallas import tpu as pltpu


def _round_up(v, m):
    return ((v + m - 1) // m) * m


# ------------------------------- Pallas kernel --------------------------------

def _fused_block_kernel(H, x_ref, w1b_ref, w2b_ref, wsb_ref, bs_ref, b2_ref,
                        o_ref, xr_ref, hr_ref):
    """Whole residual block for one image, channel-folded lane-dense layout.

    x_ref  : (1, H+2, W*C8) f32  row-padded, channel-folded input (pipelined)
    w1b_ref: (3, W*C8, W*C8)     conv1 row-banded weights (mxu dtype)
    w2b_ref: (3, W*C8, W*CP)     conv2 row-banded weights (mxu dtype)
    wsb_ref: (W*C8, W*CP)        1x1 shortcut block-diagonal weights (mxu dtype)
    bs_ref / b2_ref: (1, W*CP)   folded biases (f32)
    o_ref  : (1, H, W*CP)        lane-dense folded output
    xr_ref : VMEM (H+2, W*C8)    ReLU'd input tile (mxu dtype)
    hr_ref : VMEM (H+2, W*C8)    zero-bordered ReLU'd conv1 output (f32)
    """
    x = x_ref[0]                                             # (H+2, W*C8) f32

    # Shortcut: 1x1 conv on the raw (un-ReLU'd) centre rows, one banded matmul.
    sc = jnp.dot(x[1:1 + H, :].astype(wsb_ref.dtype), wsb_ref[...],
                 preferred_element_type=jnp.float32) + bs_ref[...]

    # ReLU once on the whole tile (zero pad rows stay zero); cast once for MXU.
    xr_ref[...] = jnp.maximum(x, 0.0).astype(xr_ref.dtype)

    # conv1 (3x3, Cin->Cin, no bias): 3 row-shifted banded matmuls, f32 acc.
    h = None
    for kh in range(3):
        d = jnp.dot(xr_ref[kh:kh + H, :], w1b_ref[kh],
                    preferred_element_type=jnp.float32)
        h = d if h is None else h + d

    # Zero-bordered ReLU(h): conv2's pad=1 halo rows, kept entirely in VMEM.
    hr_ref[...] = jnp.zeros_like(hr_ref)
    hr_ref[1:1 + H, :] = jnp.maximum(h, 0.0)

    # conv2 (3x3, Cin->Cout) + bias + shortcut residual.
    acc = None
    for kh in range(3):
        d = jnp.dot(hr_ref[kh:kh + H, :].astype(w2b_ref.dtype), w2b_ref[kh],
                    preferred_element_type=jnp.float32)
        acc = d if acc is None else acc + d
    acc = acc + b2_ref[...] + sc

    o_ref[...] = acc[None, :, :].astype(o_ref.dtype)         # (1, H, W*CP)


# ------------------------------ wrapper (JAX) ----------------------------------

def _conv_band(w_oihw, C8, CP, W, dtype):
    """PyTorch (O, I, 3, 3) conv weight -> (3, W*C8, W*CP) row-banded matrices.

    B[kh, wi*C8 + ci, wo*CP + co] = w[co, ci, kh, kw] where wi = wo + kw - 1,
    kw in {0,1,2}; out-of-range wi (the width zero padding) are simply dropped.
    """
    O, I = w_oihw.shape[0], w_oihw.shape[1]
    t = jnp.transpose(w_oihw, (2, 3, 1, 0))                      # (3, 3, I, O)
    t = jnp.pad(t, ((0, 0), (0, 0), (0, C8 - I), (0, CP - O)))   # (3, 3, C8, CP)
    wi = jnp.arange(W)[:, None]
    wo = jnp.arange(W)[None, :]
    shift = jnp.stack(
        [(wi == wo + (kw - 1)).astype(jnp.float32) for kw in range(3)])  # (3,W,W)
    B = jnp.einsum('xab,kxio->kaibo', shift, t.astype(jnp.float32))
    return B.reshape(3, W * C8, W * CP).astype(dtype)


def residual_block(x_nchw, params, *, mxu_dtype=jnp.float32):
    """BResidualBlock forward (resample=None, norm=None, act=ReLU), NCHW in/out."""
    N, Cin, H, W = x_nchw.shape
    Cout = params["w_s"].shape[0]

    C8 = _round_up(Cin, 8)     # folded input channels  (lane-dense when W*C8 % 128 == 0)
    CP = _round_up(Cout, 8)    # folded output channels (NOT padded to 128)
    WC8, WCP = W * C8, W * CP

    # Channel-fold + row-pad the input: (N, Cin, H, W) -> (N, H+2, W*C8).
    x = jnp.transpose(x_nchw, (0, 2, 3, 1))                          # NHWC
    x = jnp.pad(x, ((0, 0), (0, 0), (0, 0), (0, C8 - Cin)))
    xp = jnp.pad(x.reshape(N, H, WC8), ((0, 0), (1, 1), (0, 0)))     # (N, H+2, WC8)

    # Banded / folded weights and biases (built once in XLA, tiny).
    w1b = _conv_band(params["w1"], C8, C8, W, mxu_dtype)             # (3, WC8, WC8)
    w2b = _conv_band(params["w2"], C8, CP, W, mxu_dtype)             # (3, WC8, WCP)
    ws_mat = jnp.pad(params["w_s"].reshape(Cout, Cin).T,
                     ((0, C8 - Cin), (0, CP - Cout))).astype(jnp.float32)
    wsb = jnp.einsum('ab,io->aibo', jnp.eye(W, dtype=jnp.float32),
                     ws_mat).reshape(WC8, WCP).astype(mxu_dtype)     # (WC8, WCP)
    bs = jnp.tile(jnp.pad(params["b_s"], (0, CP - Cout)), W).reshape(1, WCP)
    b2 = jnp.tile(jnp.pad(params["b2"], (0, CP - Cout)), W).reshape(1, WCP)
    bs, b2 = bs.astype(jnp.float32), b2.astype(jnp.float32)

    out = pl.pallas_call(
        functools.partial(_fused_block_kernel, H),
        out_shape=jax.ShapeDtypeStruct((N, H, WCP), jnp.float32),
        grid=(N,),
        in_specs=[
            pl.BlockSpec((1, H + 2, WC8), lambda n: (n, 0, 0)),      # x (pipelined)
            pl.BlockSpec((3, WC8, WC8), lambda n: (0, 0, 0)),        # conv1 bands
            pl.BlockSpec((3, WC8, WCP), lambda n: (0, 0, 0)),        # conv2 bands
            pl.BlockSpec((WC8, WCP), lambda n: (0, 0)),              # shortcut
            pl.BlockSpec((1, WCP), lambda n: (0, 0)),                # b_s
            pl.BlockSpec((1, WCP), lambda n: (0, 0)),                # b2
        ],
        out_specs=pl.BlockSpec((1, H, WCP), lambda n: (n, 0, 0)),
        scratch_shapes=[pltpu.VMEM((H + 2, WC8), mxu_dtype),
                        pltpu.VMEM((H + 2, WC8), jnp.float32)],
        compiler_params=pltpu.CompilerParams(
            dimension_semantics=("parallel",)),
    )(xp, w1b, w2b, wsb, bs, b2)

    # Unfold channels, drop padding, back to NCHW (module interface).
    out = out.reshape(N, H, W, CP)[..., :Cout]
    return jnp.transpose(out, (0, 3, 1, 2))


# ---------------------------- pure-JAX reference --------------------------------

def ref_block(x, p):
    def conv(inp, w, pad):
        return lax.conv_general_dilated(
            inp, w, (1, 1), [(pad, pad), (pad, pad)],
            dimension_numbers=("NCHW", "OIHW", "NCHW"))
    sc = conv(x, p["w_s"], 0) + p["b_s"][None, :, None, None]
    h = conv(jax.nn.relu(x), p["w1"], 1)
    h = conv(jax.nn.relu(h), p["w2"], 1) + p["b2"][None, :, None, None]
    return sc + h


# ----------------------------------- main ----------------------------------------

if __name__ == "__main__":
    N, Cin, Cout, H, W = 2, 4, 8, 16, 16
    key = jax.random.PRNGKey(0)
    ks = jax.random.split(key, 6)
    x = jax.random.normal(ks[0], (N, Cin, H, W), jnp.float32)
    params = {
        "w_s": 0.1 * jax.random.normal(ks[1], (Cout, Cin, 1, 1), jnp.float32),
        "b_s": 0.1 * jax.random.normal(ks[2], (Cout,), jnp.float32),
        "w1":  0.1 * jax.random.normal(ks[3], (Cin, Cin, 3, 3), jnp.float32),
        "w2":  0.1 * jax.random.normal(ks[4], (Cout, Cin, 3, 3), jnp.float32),
        "b2":  0.1 * jax.random.normal(ks[5], (Cout,), jnp.float32),
    }
    ref = ref_block(x, params)

    # f32 MXU operands (v5e-friendly path) — tight tolerance.
    run_f32 = jax.jit(functools.partial(residual_block, mxu_dtype=jnp.float32))
    out = jax.block_until_ready(run_f32(x, params))
    np.testing.assert_allclose(np.asarray(out), np.asarray(ref), rtol=1e-4, atol=1e-4)

    # bf16 MXU operands, f32 accumulation (recommended on v6e/v7x) — loose tolerance.
    run_bf16 = jax.jit(functools.partial(residual_block, mxu_dtype=jnp.bfloat16))
    out_bf16 = jax.block_until_ready(run_bf16(x, params))
    np.testing.assert_allclose(np.asarray(out_bf16), np.asarray(ref), rtol=5e-2, atol=5e-2)

    print("KERNEL_OK")
</pallas_src>

<mosaic_0001>
module attributes {stable_mosaic.version = 11 : i64} {
  func.func @_fused_block_kernel(%arg0: i32, %arg1: memref<1x18x128xf32, #tpu.memory_space<vmem>>, %arg2: memref<3x128x128xf32, #tpu.memory_space<vmem>>, %arg3: memref<3x128x128xf32, #tpu.memory_space<vmem>>, %arg4: memref<128x128xf32, #tpu.memory_space<vmem>>, %arg5: memref<1x128xf32, #tpu.memory_space<vmem>>, %arg6: memref<1x128xf32, #tpu.memory_space<vmem>>, %arg7: memref<1x16x128xf32, #tpu.memory_space<vmem>>, %arg8: memref<18x128xf32, #tpu.memory_space<vmem>>, %arg9: memref<18x128xf32, #tpu.memory_space<vmem>>) attributes {dimension_semantics = [#tpu.dimension_semantics<parallel>], iteration_bounds = array<i64: 2>, scalar_prefetch = 0 : i64, scratch_operands = 2 : i64, tpu.core_type = #tpu.core_type<tc>, window_params = [{transform_indices = @transform_0, window_bounds = array<i64: 1, 18, 128>}, {pipeline_mode = #tpu.pipeline_mode<synchronous>, transform_indices = @transform_1, window_bounds = array<i64: 3, 128, 128>}, {pipeline_mode = #tpu.pipeline_mode<synchronous>, transform_indices = @transform_2, window_bounds = array<i64: 3, 128, 128>}, {pipeline_mode = #tpu.pipeline_mode<synchronous>, transform_indices = @transform_3, window_bounds = array<i64: 128, 128>}, {pipeline_mode = #tpu.pipeline_mode<synchronous>, transform_indices = @transform_4, window_bounds = array<i64: 1, 128>}, {pipeline_mode = #tpu.pipeline_mode<synchronous>, transform_indices = @transform_5, window_bounds = array<i64: 1, 128>}, {transform_indices = @transform_6, window_bounds = array<i64: 1, 16, 128>}]} {
    %c0 = arith.constant 0 : index
    %c0_0 = arith.constant 0 : index
    %c0_1 = arith.constant 0 : index
    %0 = vector.load %arg1[%c0, %c0_0, %c0_1] : memref<1x18x128xf32, #tpu.memory_space<vmem>>, vector<1x18x128xf32>
    %1 = vector.shape_cast %0 : vector<1x18x128xf32> to vector<18x128xf32>
    %2 = vector.extract_strided_slice %1 {offsets = [1, 0], sizes = [16, 128], strides = [1, 1]} : vector<18x128xf32> to vector<16x128xf32>
    %c0_2 = arith.constant 0 : index
    %c0_3 = arith.constant 0 : index
    %3 = vector.load %arg4[%c0_2, %c0_3] : memref<128x128xf32, #tpu.memory_space<vmem>>, vector<128x128xf32>
    %cst = arith.constant dense<0.000000e+00> : vector<16x128xf32>
    %4 = tpu.matmul %2, %3, %cst {dimension_numbers = #tpu.dot_dimension_numbers<[1], [0], [0], [1], [0, 0, 1, 1], [], []>} : vector<16x128xf32>, vector<128x128xf32>, vector<16x128xf32> -> vector<16x128xf32>
    %c0_4 = arith.constant 0 : index
    %c0_5 = arith.constant 0 : index
    %5 = vector.load %arg5[%c0_4, %c0_5] : memref<1x128xf32, #tpu.memory_space<vmem>>, vector<1x128xf32>
    %6 = vector.broadcast %5 : vector<1x128xf32> to vector<16x128xf32>
    %7 = arith.addf %4, %6 : vector<16x128xf32>
    %cst_6 = arith.constant 0.000000e+00 : f32
    %8 = vector.broadcast %cst_6 : f32 to vector<18x128xf32>
    %9 = arith.maximumf %1, %8 : vector<18x128xf32>
    %c0_7 = arith.constant 0 : index
    %c0_8 = arith.constant 0 : index
    %10 = vector.load %arg8[%c0_7, %c0_8] : memref<18x128xf32, #tpu.memory_space<vmem>>, vector<18x128xf32>
    tpu.vector_store %arg8[%c0_7, %c0_8], %9 {strides = array<i32>} : memref<18x128xf32, #tpu.memory_space<vmem>>, vector<18x128xf32>,
    %c0_9 = arith.constant 0 : index
    %c0_10 = arith.constant 0 : index
    %11 = vector.load %arg8[%c0_9, %c0_10] : memref<18x128xf32, #tpu.memory_space<vmem>>, vector<16x128xf32>
    %c0_11 = arith.constant 0 : index
    %c0_12 = arith.constant 0 : index
    %c0_13 = arith.constant 0 : index
    %12 = vector.load %arg2[%c0_11, %c0_12, %c0_13] : memref<3x128x128xf32, #tpu.memory_space<vmem>>, vector<1x128x128xf32>
    %13 = vector.shape_cast %12 : vector<1x128x128xf32> to vector<128x128xf32>
    %cst_14 = arith.constant dense<0.000000e+00> : vector<16x128xf32>
    %14 = tpu.matmul %11, %13, %cst_14 {dimension_numbers = #tpu.dot_dimension_numbers<[1], [0], [0], [1], [0, 0, 1, 1], [], []>} : vector<16x128xf32>, vector<128x128xf32>, vector<16x128xf32> -> vector<16x128xf32>
    %c1 = arith.constant 1 : index
    %c0_15 = arith.constant 0 : index
    %15 = vector.load %arg8[%c1, %c0_15] : memref<18x128xf32, #tpu.memory_space<vmem>>, vector<16x128xf32>
    %c1_16 = arith.constant 1 : index
    %c0_17 = arith.constant 0 : index
    %c0_18 = arith.constant 0 : index
    %16 = vector.load %arg2[%c1_16, %c0_17, %c0_18] : memref<3x128x128xf32, #tpu.memory_space<vmem>>, vector<1x128x128xf32>
    %17 = vector.shape_cast %16 : vector<1x128x128xf32> to vector<128x128xf32>
    %cst_19 = arith.constant dense<0.000000e+00> : vector<16x128xf32>
    %18 = tpu.matmul %15, %17, %cst_19 {dimension_numbers = #tpu.dot_dimension_numbers<[1], [0], [0], [1], [0, 0, 1, 1], [], []>} : vector<16x128xf32>, vector<128x128xf32>, vector<16x128xf32> -> vector<16x128xf32>
    %19 = arith.addf %14, %18 : vector<16x128xf32>
    %c2 = arith.constant 2 : index
    %c0_20 = arith.constant 0 : index
    %20 = vector.load %arg8[%c2, %c0_20] : memref<18x128xf32, #tpu.memory_space<vmem>>, vector<16x128xf32>
    %c2_21 = arith.constant 2 : index
    %c0_22 = arith.constant 0 : index
    %c0_23 = arith.constant 0 : index
    %21 = vector.load %arg2[%c2_21, %c0_22, %c0_23] : memref<3x128x128xf32, #tpu.memory_space<vmem>>, vector<1x128x128xf32>
    %22 = vector.shape_cast %21 : vector<1x128x128xf32> to vector<128x128xf32>
    %cst_24 = arith.constant dense<0.000000e+00> : vector<16x128xf32>
    %23 = tpu.matmul %20, %22, %cst_24 {dimension_numbers = #tpu.dot_dimension_numbers<[1], [0], [0], [1], [0, 0, 1, 1], [], []>} : vector<16x128xf32>, vector<128x128xf32>, vector<16x128xf32> -> vector<16x128xf32>
    %24 = arith.addf %19, %23 : vector<16x128xf32>
    %cst_25 = arith.constant 0.000000e+00 : f32
    %25 = vector.broadcast %cst_25 : f32 to vector<18x128xf32>
    %c0_26 = arith.constant 0 : index
    %c0_27 = arith.constant 0 : index
    %26 = vector.load %arg9[%c0_26, %c0_27] : memref<18x128xf32, #tpu.memory_space<vmem>>, vector<18x128xf32>
    tpu.vector_store %arg9[%c0_26, %c0_27], %25 {strides = array<i32>} : memref<18x128xf32, #tpu.memory_space<vmem>>, vector<18x128xf32>,
    %cst_28 = arith.constant 0.000000e+00 : f32
    %27 = vector.broadcast %cst_28 : f32 to vector<16x128xf32>
    %28 = arith.maximumf %24, %27 : vector<16x128xf32>
    %c1_29 = arith.constant 1 : index
    %c0_30 = arith.constant 0 : index
    %29 = vector.load %arg9[%c1_29, %c0_30] : memref<18x128xf32, #tpu.memory_space<vmem>>, vector<16x128xf32>
    tpu.vector_store %arg9[%c1_29, %c0_30], %28 {strides = array<i32>} : memref<18x128xf32, #tpu.memory_space<vmem>>, vector<16x128xf32>,
    %c0_31 = arith.constant 0 : index
    %c0_32 = arith.constant 0 : index
    %30 = vector.load %arg9[%c0_31, %c0_32] : memref<18x128xf32, #tpu.memory_space<vmem>>, vector<16x128xf32>
    %c0_33 = arith.constant 0 : index
    %c0_34 = arith.constant 0 : index
    %c0_35 = arith.constant 0 : index
    %31 = vector.load %arg3[%c0_33, %c0_34, %c0_35] : memref<3x128x128xf32, #tpu.memory_space<vmem>>, vector<1x128x128xf32>
    %32 = vector.shape_cast %31 : vector<1x128x128xf32> to vector<128x128xf32>
    %cst_36 = arith.constant dense<0.000000e+00> : vector<16x128xf32>
    %33 = tpu.matmul %30, %32, %cst_36 {dimension_numbers = #tpu.dot_dimension_numbers<[1], [0], [0], [1], [0, 0, 1, 1], [], []>} : vector<16x128xf32>, vector<128x128xf32>, vector<16x128xf32> -> vector<16x128xf32>
    %c1_37 = arith.constant 1 : index
    %c0_38 = arith.constant 0 : index
    %34 = vector.load %arg9[%c1_37, %c0_38] : memref<18x128xf32, #tpu.memory_space<vmem>>, vector<16x128xf32>
    %c1_39 = arith.constant 1 : index
    %c0_40 = arith.constant 0 : index
    %c0_41 = arith.constant 0 : index
    %35 = vector.load %arg3[%c1_39, %c0_40, %c0_41] : memref<3x128x128xf32, #tpu.memory_space<vmem>>, vector<1x128x128xf32>
    %36 = vector.shape_cast %35 : vector<1x128x128xf32> to vector<128x128xf32>
    %cst_42 = arith.constant dense<0.000000e+00> : vector<16x128xf32>
    %37 = tpu.matmul %34, %36, %cst_42 {dimension_numbers = #tpu.dot_dimension_numbers<[1], [0], [0], [1], [0, 0, 1, 1], [], []>} : vector<16x128xf32>, vector<128x128xf32>, vector<16x128xf32> -> vector<16x128xf32>
    %38 = arith.addf %33, %37 : vector<16x128xf32>
    %c2_43 = arith.constant 2 : index
    %c0_44 = arith.constant 0 : index
    %39 = vector.load %arg9[%c2_43, %c0_44] : memref<18x128xf32, #tpu.memory_space<vmem>>, vector<16x128xf32>
    %c2_45 = arith.constant 2 : index
    %c0_46 = arith.constant 0 : index
    %c0_47 = arith.constant 0 : index
    %40 = vector.load %arg3[%c2_45, %c0_46, %c0_47] : memref<3x128x128xf32, #tpu.memory_space<vmem>>, vector<1x128x128xf32>
    %41 = vector.shape_cast %40 : vector<1x128x128xf32> to vector<128x128xf32>
    %cst_48 = arith.constant dense<0.000000e+00> : vector<16x128xf32>
    %42 = tpu.matmul %39, %41, %cst_48 {dimension_numbers = #tpu.dot_dimension_numbers<[1], [0], [0], [1], [0, 0, 1, 1], [], []>} : vector<16x128xf32>, vector<128x128xf32>, vector<16x128xf32> -> vector<16x128xf32>
    %43 = arith.addf %38, %42 : vector<16x128xf32>
    %c0_49 = arith.constant 0 : index
    %c0_50 = arith.constant 0 : index
    %44 = vector.load %arg6[%c0_49, %c0_50] : memref<1x128xf32, #tpu.memory_space<vmem>>, vector<1x128xf32>
    %45 = vector.broadcast %44 : vector<1x128xf32> to vector<16x128xf32>
    %46 = arith.addf %43, %45 : vector<16x128xf32>
    %47 = arith.addf %46, %7 : vector<16x128xf32>
    %48 = vector.shape_cast %47 : vector<16x128xf32> to vector<1x16x128xf32>
    %c0_51 = arith.constant 0 : index
    %c0_52 = arith.constant 0 : index
    %c0_53 = arith.constant 0 : index
    %49 = vector.load %arg7[%c0_51, %c0_52, %c0_53] : memref<1x16x128xf32, #tpu.memory_space<vmem>>, vector<1x16x128xf32>
    tpu.vector_store %arg7[%c0_51, %c0_52, %c0_53], %48 {strides = array<i32>} : memref<1x16x128xf32, #tpu.memory_space<vmem>>, vector<1x16x128xf32>,
    return
  }
  func.func @transform_0(%arg0: i32) -> (i32, i32, i32) {
    %c0_i32 = arith.constant 0 : i32
    %c0_i32_0 = arith.constant 0 : i32
    %c0_i32_1 = arith.constant 0 : i32
    return %arg0, %c0_i32, %c0_i32_0 : i32, i32, i32
  }
  func.func @transform_1(%arg0: i32) -> (i32, i32, i32) {
    %c0_i32 = arith.constant 0 : i32
    %c0_i32_0 = arith.constant 0 : i32
    %c0_i32_1 = arith.constant 0 : i32
    %c0_i32_2 = arith.constant 0 : i32
    return %c0_i32, %c0_i32_0, %c0_i32_1 : i32, i32, i32
  }
  func.func @transform_2(%arg0: i32) -> (i32, i32, i32) {
    %c0_i32 = arith.constant 0 : i32
    %c0_i32_0 = arith.constant 0 : i32
    %c0_i32_1 = arith.constant 0 : i32
    %c0_i32_2 = arith.constant 0 : i32
    return %c0_i32, %c0_i32_0, %c0_i32_1 : i32, i32, i32
  }
  func.func @transform_3(%arg0: i32) -> (i32, i32) {
    %c0_i32 = arith.constant 0 : i32
    %c0_i32_0 = arith.constant 0 : i32
    %c0_i32_1 = arith.constant 0 : i32
    return %c0_i32, %c0_i32_0 : i32, i32
  }
  func.func @transform_4(%arg0: i32) -> (i32, i32) {
    %c0_i32 = arith.constant 0 : i32
    %c0_i32_0 = arith.constant 0 : i32
    %c0_i32_1 = arith.constant 0 : i32
    return %c0_i32, %c0_i32_0 : i32, i32
  }
  func.func @transform_5(%arg0: i32) -> (i32, i32) {
    %c0_i32 = arith.constant 0 : i32
    %c0_i32_0 = arith.constant 0 : i32
    %c0_i32_1 = arith.constant 0 : i32
    return %c0_i32, %c0_i32_0 : i32, i32
  }
  func.func @transform_6(%arg0: i32) -> (i32, i32, i32) {
    %c0_i32 = arith.constant 0 : i32
    %c0_i32_0 = arith.constant 0 : i32
    %c0_i32_1 = arith.constant 0 : i32
    return %arg0, %c0_i32, %c0_i32_0 : i32, i32, i32
  }
}

</mosaic_0001>

<bundles_post_ra>
// kernel: tile.13
= control target key start
LH: loop header
LB: loop body
LE: loop exit
PB: predicated region body
PF: predicated region fallthrough
CT: control target
= control target key end

     0   :  { %s28_s0 = inlined_call_operand.vmem [shape: f32[8], index: 0, kind: input, shape index: {}]   ;;  %s29_s1 = inlined_call_operand.vmem [shape: f32[16,8], index: 1, kind: output, shape index: {}]  }
   0x1   :  { %v4_v0 = vld [vmem:[%s28_s0] ss:$0 sm:$0xff] }
   0x2   :  { %5 = vst [vmem:[%s29_s1] sm:$0xff] %v4_v0  ;;  %8 = vst [vmem:[%s29_s1 + $0x8] sm:$0xff] %v4_v0 }

// kernel: tile.14
= control target key start
LH: loop header
LB: loop body
LE: loop exit
PB: predicated region body
PF: predicated region fallthrough
CT: control target
= control target key end

     0   :  { %s131_s10 = smov 120   ;;  %s132_s11 = smov 104   ;;  %vm3_vm0 = vcmask 64512   ;;  %vm9_vm1 = vcmask 1048512   ;;  %vm15_vm2 = vcmask 982912   ;;  %vm21_vm3 = vcmask 917312   ;;  %s207_s0 = inlined_call_operand.vmem [shape: f32[16,8], index: 0, kind: input, shape index: {}]   ;;  %s208_s1 = inlined_call_operand.vmem [shape: f32[1,128], index: 1, kind: output, shape index: {}]  }
   0x1   :  { %v101_v0 = vld [vmem:[%s207_s0 + $0xf] sm:$0x1]   ;;  %v103_v1 = vld [vmem:[%s207_s0 + $0xd] sm:$0x1]   ;;  %v102_v2 = vld [vmem:[%s207_s0 + $0xe] sm:$0x1]  }
   0x2   :  { %7 = vrot.lane.b32.xlu0 %v101_v0, %s131_s10  ;;  %19 = vrot.lane.b32.xlu1 %v103_v1, %s132_s11  ;;  %v104_v3 = vld [vmem:[%s207_s0 + $0xc] sm:$0x1]   ;;  %s133_s16 = smov 112   ;;  %s134_s17 = smov 96   ;;  %v105_v4 = vld [vmem:[%s207_s0 + $0xb] sm:$0x1]  }
   0x3   :  { %v106_v5 = vld [vmem:[%s207_s0 + $0xa] sm:$0x1]   ;;  %v2_v6 = vld [vmem:[%s207_s0] sm:$0x1]   ;;  %s135_s24 = smov 88   ;;  %s136_s25 = smov 80  }
   0x4   :  { %4 = vst.msk [vmem:[#allocation0] sm:$0x1] %vm3_vm0, %v2_v6   ;;  %v107_v7 = vld [vmem:[%s207_s0 + $0x9] sm:$0x1]   ;;  %v108_v8 = vld [vmem:[%s207_s0 + $0x8] sm:$0x1]  }
   0x5   :  { %s137_s30 = smov 72   ;;  %s138_s2 = smov 64   ;;  %v109_v9 = vld [vmem:[%s207_s0 + $0x7] sm:$0x1]   ;;  %v110_v10 = vld [vmem:[%s207_s0 + $0x6] sm:$0x1]  }
   0x6   :  { %13 = vrot.lane.b32.xlu0 %v102_v2, %s133_s16  ;;  %25 = vrot.lane.b32.xlu1 %v104_v3, %s134_s17  ;;  %s139_s7 = smov 56   ;;  %s140_s8 = smov 48   ;;  %v111_v11 = vld [vmem:[%s207_s0 + $0x5] sm:$0x1]   ;;  %v112_v12 = vld [vmem:[%s207_s0 + $0x4] sm:$0x1]  }
   0x7   :  { %s141_s13 = smov 40   ;;  %s142_s14 = smov 32   ;;  %v113_v13 = vld [vmem:[%s207_s0 + $0x3] sm:$0x1]   ;;  %v114_v14 = vld [vmem:[%s207_s0 + $0x2] sm:$0x1]  }
   0x8   :  { %s143_s19 = smov 24   ;;  %s144_s20 = smov 16   ;;  %v115_v15 = vld [vmem:[%s207_s0 + $0x1] sm:$0x1]   ;;  %vm27_vm4 = vcmask 851712   ;;  %vm33_vm5 = vcmask 786112  }
   0x9   :  { %s145_s0 = smov 8   ;;  %vm39_vm6 = vcmask 720512   ;;  %vm45_vm7 = vcmask 654912   ;;  %vm51_vm8 = vcmask 589312   ;;  %vm57_vm9 = vcmask 523712  }
   0xa   :  { %31 = vrot.lane.b32.xlu0 %v105_v4, %s135_s24  ;;  %37 = vrot.lane.b32.xlu1 %v106_v5, %s136_s25  ;;  %vm63_vm10 = vcmask 458112   ;;  %vm69_vm11 = vcmask 392512   ;;  %vm75_vm12 = vcmask 326912   ;;  %vm81_vm13 = vcmask 261312  }
   0xb   :  { %vm87_vm14 = vcmask 195712   ;;  %vm93_vm15 = vcmask 130112  }
   0xe   :  { %43 = vrot.lane.b32.xlu0 %v107_v7, %s137_s30  ;;  %49 = vrot.lane.b32.xlu1 %v108_v8, %s138_s2 }
  0x12   :  { %55 = vrot.lane.b32.xlu0 %v109_v9, %s139_s7  ;;  %61 = vrot.lane.b32.xlu1 %v110_v10, %s140_s8 }
  0x16   :  { %67 = vrot.lane.b32.xlu0 %v111_v11, %s141_s13  ;;  %73 = vrot.lane.b32.xlu1 %v112_v12, %s142_s14 }
  0x1a   :  { %79 = vrot.lane.b32.xlu0 %v113_v13, %s143_s19  ;;  %85 = vrot.lane.b32.xlu1 %v114_v14, %s144_s20 }
  0x1e   :  { %91 = vrot.lane.b32.xlu0 %v115_v15, %s145_s0 }
  0x74   :  { %v8_v16 = vpop.permute.xlu0 %7   ;;  %v20_v17 = vpop.permute.xlu1 %19  }
  0x75   :  { %10 = vst.msk [vmem:[#allocation0] sm:$0x1] %vm9_vm1, %v8_v16  }
  0x78   :  { %v14_v18 = vpop.permute.xlu0 %13   ;;  %v26_v19 = vpop.permute.xlu1 %25  }
  0x79   :  { %16 = vst.msk [vmem:[#allocation0] sm:$0x1] %vm15_vm2, %v14_v18  }
  0x7a   :  { %22 = vst.msk [vmem:[#allocation0] sm:$0x1] %vm21_vm3, %v20_v17  }
  0x7b   :  { %28 = vst.msk [vmem:[#allocation0] sm:$0x1] %vm27_vm4, %v26_v19  }
  0x7c   :  { %v32_v20 = vpop.permute.xlu0 %31   ;;  %v38_v21 = vpop.permute.xlu1 %37  }
  0x7d   :  { %34 = vst.msk [vmem:[#allocation0] sm:$0x1] %vm33_vm5, %v32_v20  }
  0x7e   :  { %40 = vst.msk [vmem:[#allocation0] sm:$0x1] %vm39_vm6, %v38_v21  }
  0x80   :  { %v44_v22 = vpop.permute.xlu0 %43   ;;  %v50_v23 = vpop.permute.xlu1 %49  }
  0x81   :  { %46 = vst.msk [vmem:[#allocation0] sm:$0x1] %vm45_vm7, %v44_v22  }
  0x82   :  { %52 = vst.msk [vmem:[#allocation0] sm:$0x1] %vm51_vm8, %v50_v23  }
  0x84   :  { %v56_v24 = vpop.permute.xlu0 %55   ;;  %v62_v25 = vpop.permute.xlu1 %61  }
  0x85   :  { %58 = vst.msk [vmem:[#allocation0] sm:$0x1] %vm57_vm9, %v56_v24  }
  0x86   :  { %64 = vst.msk [vmem:[#allocation0] sm:$0x1] %vm63_vm10, %v62_v25  }
  0x88   :  { %v68_v26 = vpop.permute.xlu0 %67   ;;  %v74_v27 = vpop.permute.xlu1 %73  }
  0x89   :  { %70 = vst.msk [vmem:[#allocation0] sm:$0x1] %vm69_vm11, %v68_v26  }
  0x8a   :  { %76 = vst.msk [vmem:[#allocation0] sm:$0x1] %vm75_vm12, %v74_v27  }
  0x8c   :  { %v80_v28 = vpop.permute.xlu0 %79   ;;  %v86_v29 = vpop.permute.xlu1 %85  }
  0x8d   :  { %82 = vst.msk [vmem:[#allocation0] sm:$0x1] %vm81_vm13, %v80_v28  }
  0x8e   :  { %88 = vst.msk [vmem:[#allocation0] sm:$0x1] %vm87_vm14, %v86_v29  }
  0x90   :  { %v92_v30 = vpop.permute.xlu0 %91  }
  0x91   :  { %94 = vst.msk [vmem:[#allocation0] sm:$0x1] %vm93_vm15, %v92_v30  }
  0x98   :  { %v98_v31 = vld [vmem:[#allocation0] sm:$0x1] }
  0x99   :  { %100 = vst [vmem:[%s208_s1] sm:$0x1] %v98_v31 }

// kernel: residual_block.1
= control target key start
LH: loop header
LB: loop body
LE: loop exit
PB: predicated region body
PF: predicated region fallthrough
CT: control target
= control target key end

     0   :  { %s1751_s21 = smov 0   ;;  %s2140_s0 = inlined_call_operand.vmem [shape: f32[2,18,128], index: 0, kind: input, shape index: {}]   ;;  %s2141_s1 = inlined_call_operand.vmem [shape: f32[3,128,128], index: 1, kind: input, shape index: {}]   ;;  %s2142_s2 = inlined_call_operand.vmem [shape: f32[3,128,128], index: 2, kind: input, shape index: {}]   ;;  %s2143_s3 = inlined_call_operand.vmem [shape: f32[128,128], index: 3, kind: input, shape index: {}]   ;;  %s2144_s4 = inlined_call_operand.vmem [shape: f32[1,128], index: 4, kind: input, shape index: {}]   ;;  %s2145_s5 = inlined_call_operand.vmem [shape: f32[1,128], index: 5, kind: input, shape index: {}]   ;;  %s2146_s6 = inlined_call_operand.vmem [shape: f32[2,16,128], index: 6, kind: output, shape index: {}]  }
   0x1 LB: > { %s1011_s22 = sadd.s32 4294967295, %s1713_s21   ;;  %p1015_p0 = scmp.ge.s32.totalorder %s1713_s21, 1  ;;  %s1713_s21 = sphi %s1751_s21, %s16_s21  }
   0x2   : > { %p212_p1 = scmp.lt.s32.totalorder %s1713_s21, 3 }
   0x4   : > { %p213_p2 = pnand %p1015_p0, %p212_p1 }
   0x5   : > { %v1020_v0 = vld [vmem:[%s2141_s1 + $0x80] sm:$0xff] (!%p213_p2)  ;;  %v1021_v1 = vld [vmem:[%s2141_s1 + $0x88] sm:$0xff] (!%p213_p2)  ;;  %v1022_v2 = vld [vmem:[%s2141_s1 + $0x90] sm:$0xff] (!%p213_p2)  ;;  %p242_p3 = scmp.lt.s32.totalorder (!%p213_p2), %s1011_s22, 1  ;;  %vm281_vm0 = vcmask (!%p213_p2), 1046528  }
   0x6   : > { %216 = sbr.rel (%p213_p2) target bundleno = 602 (0x25a), region = 44  ;;  %v1491_v3 = vpack.c.bf16 (!%p213_p2), %v1021_v1, %v1020_v0  ;;  %v1023_v4 = vld [vmem:[%s2141_s1 + $0x98] sm:$0xff] (!%p213_p2)  ;;  %v1024_v6 = vld [vmem:[%s2141_s1 + $0xa0] sm:$0xff] (!%p213_p2)  ;;  %v1025_v7 = vld [vmem:[%s2141_s1 + $0xa8] sm:$0xff] (!%p213_p2) }
   0x7   : > { %v1495_v5 = vpack.c.bf16 (!%p213_p2), %v1023_v4, %v1022_v2  ;;  %v1499_v8 = vpack.c.bf16 (!%p213_p2), %v1025_v7, %v1024_v6  ;;  %v1026_v9 = vld [vmem:[%s2141_s1 + $0xb0] sm:$0xff] (!%p213_p2)  ;;  %v1027_v10 = vld [vmem:[%s2141_s1 + $0xb8] sm:$0xff] (!%p213_p2)  ;;  %v1028_v20 = vld [vmem:[%s2141_s1 + $0xc0] sm:$0xff] (!%p213_p2) }
   0x8   : > { %1492 = vmatprep.subr.bf16.mxu1 (!%p213_p2), %v1491_v3  ;;  %v1503_v17 = vpack.c.bf16 (!%p213_p2), %v1027_v10, %v1026_v9  ;;  %v1029_v21 = vld [vmem:[%s2141_s1 + $0xc8] sm:$0xff] (!%p213_p2)  ;;  %v1030_v24 = vld [vmem:[%s2141_s1 + $0xd0] sm:$0xff] (!%p213_p2)  ;;  %v1031_v25 = vld [vmem:[%s2141_s1 + $0xd8] sm:$0xff] (!%p213_p2) }
   0x9   : > { %1494 = vmatpush3.bf16.msra.mxu1 (!%p213_p2), %v1491_v3  ;;  %v1507_v23 = vpack.c.bf16 (!%p213_p2), %v1029_v21, %v1028_v20  ;;  %v1511_v26 = vpack.c.bf16 (!%p213_p2), %v1031_v25, %v1030_v24  ;;  %v1032_v27 = vld [vmem:[%s2141_s1 + $0xe0] sm:$0xff] (!%p213_p2)  ;;  %v1033_v29 = vld [vmem:[%s2141_s1 + $0xe8] sm:$0xff] (!%p213_p2)  ;;  %v257_v33 = vld [vmem:[%s2143_s3 + $0x10] sm:$0xff] (!%p213_p2) }
   0xa   : > { %1496 = vmatprep.subr.bf16.mxu1 (!%p213_p2), %v1495_v5  ;;  %v255_v30 = vld [vmem:[%s2143_s3] sm:$0xff] (!%p213_p2)  ;;  %v256_v31 = vld [vmem:[%s2143_s3 + $0x8] sm:$0xff] (!%p213_p2)  ;;  %v258_v34 = vld [vmem:[%s2143_s3 + $0x18] sm:$0xff] (!%p213_p2)  ;;  %v1515_v38 = vpack.c.bf16 (!%p213_p2), %v1033_v29, %v1032_v27 }
   0xb   : > { %v1459_v32 = vpack.c.bf16 (!%p213_p2), %v256_v31, %v255_v30  ;;  %v1463_v35 = vpack.c.bf16 (!%p213_p2), %v258_v34, %v257_v33  ;;  %v259_v36 = vld [vmem:[%s2143_s3 + $0x20] sm:$0xff] (!%p213_p2)  ;;  %v260_v37 = vld [vmem:[%s2143_s3 + $0x28] sm:$0xff] (!%p213_p2)  ;;  %v1034_v39 = vld [vmem:[%s2141_s1 + $0xf0] sm:$0xff] (!%p213_p2) }
   0xc   : > { %v1035_v40 = vld [vmem:[%s2141_s1 + $0xf8] sm:$0xff] (!%p213_p2)  ;;  %v1467_v41 = vpack.c.bf16 (!%p213_p2), %v260_v37, %v259_v36  ;;  %v261_v42 = vld [vmem:[%s2143_s3 + $0x30] sm:$0xff] (!%p213_p2)  ;;  %v372_v45 = vld [vmem:[%s2141_s1] sm:$0xff] (!%p213_p2) }
   0xd   : > { %s2148_s22 = smov (!%p242_p3, %s1011_s22), 1  ;;  %1498 = vmatpush3.bf16.msra.mxu1 %v1495_v5  ;;  %1460 = vmatprep.subr.bf16.mxu0 %v1459_v32  ;;  %v262_v43 = vld [vmem:[%s2143_s3 + $0x38] sm:$0xff]  ;;  %v1519_v44 = vpack.c.bf16 %v1035_v40, %v1034_v39  ;;  %v373_v46 = vld [vmem:[%s2141_s1 + $0x8] sm:$0xff]  ;;  %v263_v48 = vld [vmem:[%s2143_s3 + $0x40] sm:$0xff] }
   0xe   : > { %s1697_s11 = smul.u32 24, %s2148_s22  ;;  %1500 = vmatprep.subr.bf16.mxu1 %v1499_v8  ;;  %1462 = vmatpush3.bf16.msra.mxu0 %v1459_v32  ;;  %v1471_v47 = vpack.c.bf16 %v262_v43, %v261_v42  ;;  %v264_v49 = vld [vmem:[%s2143_s3 + $0x48] sm:$0xff]  ;;  %v1523_v50 = vpack.c.bf16 %v373_v46, %v372_v45  ;;  %v374_v51 = vld [vmem:[%s2141_s1 + $0x10] sm:$0xff]  ;;  %v375_v52 = vld [vmem:[%s2141_s1 + $0x18] sm:$0xff]  ;;  %s1087_s9 = sshll.u32 %s2148_s22, 4 }
   0xf   : > { %1464 = vmatprep.subr.bf16.mxu0 %v1463_v35  ;;  %v1475_v53 = vpack.c.bf16 %v264_v49, %v263_v48  ;;  %v265_v55 = vld [vmem:[%s2143_s3 + $0x50] sm:$0xff]  ;;  %v266_v56 = vld [vmem:[%s2143_s3 + $0x58] sm:$0xff]  ;;  %v1527_v57 = vpack.c.bf16 %v375_v52, %v374_v51  ;;  %v376_v58 = vld [vmem:[%s2141_s1 + $0x20] sm:$0xff]  ;;  %s251_s14 = scalar_lea.vmem %s2146_s6, %s1087_s9 }
  0x10   : > { %s246_s18 = scalar_lea.vmem %s2140_s0, %s1697_s11  ;;  %v377_v59 = vld [vmem:[%s2141_s1 + $0x28] sm:$0xff]  ;;  %v1479_v60 = vpack.c.bf16 %v266_v56, %v265_v55  ;;  %v267_v61 = vld [vmem:[%s2143_s3 + $0x60] sm:$0xff]  ;;  %v378_v0 = vld [vmem:[%s2141_s1 + $0x30] sm:$0xff] }
  0x11   : > { %v1789_v11 = vld [vmem:[%s246_s18] sm:$0xff]  ;;  %v1791_v12 = vld [vmem:[%s246_s18 + $0x8] sm:$0xff]  ;;  %v1793_v13 = vld [vmem:[%s246_s18 + $0x10] sm:$0x3]  ;;  %1502 = vmatpush3.bf16.msra.mxu1 %v1499_v8  ;;  %v1531_v63 = vpack.c.bf16 %v377_v59, %v376_v58 }
  0x12   : > { %v364_v14 = vmax.f32 %v1789_v11, 0.0  ;;  %v365_v15 = vmax.f32 %v1791_v12, 0.0  ;;  %v366_v16 = vmax.f32 %v1793_v13, 0.0  ;;  %v282_v18 = vrot.slane %v1789_v11, 1  ;;  %1504 = vmatprep.subr.bf16.mxu1 %v1503_v17  ;;  %1466 = vmatpush3.bf16.msra.mxu0 %v1463_v35  ;;  %v268_v62 = vld [vmem:[%s2143_s3 + $0x68] sm:$0xff]  ;;  %v379_v1 = vld [vmem:[%s2141_s1 + $0x38] sm:$0xff] }
  0x13   : > { %v283_v19 = vrot.slane %v1791_v12, 1  ;;  %1468 = vmatprep.subr.bf16.mxu0 %v1467_v41  ;;  %v1483_v2 = vpack.c.bf16 %v268_v62, %v267_v61  ;;  %v269_v3 = vld [vmem:[%s2143_s3 + $0x70] sm:$0xff]  ;;  %v270_v4 = vld [vmem:[%s2143_s3 + $0x78] sm:$0xff]  ;;  %v1535_v5 = vpack.c.bf16 %v379_v1, %v378_v0  ;;  %v380_v6 = vld [vmem:[%s2141_s1 + $0x40] sm:$0xff] }
  0x14   : > { %367 = vst [vmem:[#allocation2] sm:$0xff] %v364_v14  ;;  %368 = vst [vmem:[#allocation2 + $0x8] sm:$0xff] %v365_v15  ;;  %v381_v7 = vld [vmem:[%s2141_s1 + $0x48] sm:$0xff]  ;;  %v1487_v8 = vpack.c.bf16 %v270_v4, %v269_v3  ;;  %v1052_v9 = vld [vmem:[%s2142_s2 + $0x80] sm:$0xff] }
  0x15   : > { %369 = vst [vmem:[#allocation2 + $0x10] sm:$0x3] %v366_v16  ;;  %v284_v22 = vsel %vm281_vm0, %v282_v18, %v283_v19  ;;  %1506 = vmatpush3.bf16.msra.mxu1 %v1503_v17  ;;  %v1053_v10 = vld [vmem:[%s2142_s2 + $0x88] sm:$0xff]  ;;  %v1539_v11 = vpack.c.bf16 %v381_v7, %v380_v6  ;;  %v383_v16 = vld [vmem:[%s2141_s1 + $0x58] sm:$0xff]  ;;  %v285_v17 = vrot.slane %v1793_v13, 1  ;;  %v1054_v20 = vld [vmem:[%s2142_s2 + $0x90] sm:$0xff] }
  0x16   : > { %1246 = vmatprep.mubr.f32.mxu0 %v284_v22  ;;  %1508 = vmatprep.subr.bf16.mxu1 %v1507_v23  ;;  %v1587_v18 = vpack.c.bf16 %v1053_v10, %v1052_v9  ;;  %v1055_v21 = vld [vmem:[%s2142_s2 + $0x98] sm:$0xff]  ;;  %v385_v13 = vld [vmem:[%s2141_s1 + $0x68] sm:$0xff]  ;;  %v386_v29 = vld [vmem:[%s2141_s1 + $0x70] sm:$0xff]  ;;  %v1715_v7 = vmov 0.0  }
  0x17   : > { %1470 = vmatpush3.bf16.msra.mxu0 %v1467_v41  ;;  %v286_v24 = vsel %vm281_vm0, %v283_v19, %v285_v17  ;;  %v1591_v25 = vpack.c.bf16 %v1055_v21, %v1054_v20  ;;  %v1057_v27 = vld [vmem:[%s2142_s2 + $0xa8] sm:$0xff]  ;;  %v387_v19 = vld [vmem:[%s2141_s1 + $0x78] sm:$0xff]  ;;  %v1058_v31 = vld [vmem:[%s2142_s2 + $0xb0] sm:$0xff]  ;;  %654 = vst [vmem:[#allocation3 + $0x8] sm:$0xff] %v1715_v7 }
  0x18   : > { %1472 = vmatprep.subr.bf16.mxu0 %v1471_v47  ;;  %v1059_v32 = vld [vmem:[%s2142_s2 + $0xb8] sm:$0xff]  ;;  %v1551_v33 = vpack.c.bf16 %v387_v19, %v386_v29  ;;  %v1036_v34 = vld [vmem:[%s2141_s1 + $0x100] sm:$0xff]  ;;  %v1037_v35 = vld [vmem:[%s2141_s1 + $0x108] sm:$0xff]  ;;  %655 = vst [vmem:[#allocation3 + $0x10] sm:$0x3] %v1715_v7 }
  0x19   : > { %1510 = vmatpush3.bf16.msra.mxu1 %v1507_v23  ;;  %v384_v23 = vld [vmem:[%s2141_s1 + $0x60] sm:$0xff]  ;;  %v1599_v36 = vpack.c.bf16 %v1059_v32, %v1058_v31  ;;  %v1555_v39 = vpack.c.bf16 %v1037_v35, %v1036_v34  ;;  %v1038_v40 = vld [vmem:[%s2141_s1 + $0x110] sm:$0xff]  ;;  %v1039_v41 = vld [vmem:[%s2141_s1 + $0x118] sm:$0xff]  ;;  %653 = vst [vmem:[#allocation3] sm:$0xff] %v1715_v7 }
  0x1a   : > { %1512 = vmatprep.subr.bf16.mxu1 %v1511_v26  ;;  %v1060_v37 = vld [vmem:[%s2142_s2 + $0xc0] sm:$0xff]  ;;  %v1559_v43 = vpack.c.bf16 %v1039_v41, %v1038_v40  ;;  %v1041_v46 = vld [vmem:[%s2141_s1 + $0x128] sm:$0xff]  ;;  %v1042_v48 = vld [vmem:[%s2141_s1 + $0x130] sm:$0xff] }
  0x1b   : > { %v388_v28 = vld [vmem:[#allocation2 + $0x1] sm:$0xff]  ;;  %1474 = vmatpush3.bf16.msra.mxu0 %v1471_v47  ;;  %v1043_v49 = vld [vmem:[%s2141_s1 + $0x138] sm:$0xff]  ;;  %v1046_v52 = vld [vmem:[%s2141_s1 + $0x150] sm:$0xff] }
  0x1c   : > { %1281 = vmatprep.mubr.f32.mxu1 %v388_v28  ;;  %v389_v54 = vld [vmem:[#allocation2 + $0x9] sm:$0xff]  ;;  %1476 = vmatprep.subr.bf16.mxu0 %v1475_v53  ;;  %v1547_v28 = vpack.c.bf16 %v385_v13, %v384_v23  ;;  %v1040_v45 = vld [vmem:[%s2141_s1 + $0x120] sm:$0xff]  ;;  %v1051_v59 = vld [vmem:[%s2141_s1 + $0x178] sm:$0xff] }
  0x1d   : > { %1514 = vmatpush3.bf16.msra.mxu1 %v1511_v26  ;;  %v1056_v26 = vld [vmem:[%s2142_s2 + $0xa0] sm:$0xff]  ;;  %v1563_v47 = vpack.c.bf16 %v1041_v46, %v1040_v45  ;;  %v1049_v56 = vld [vmem:[%s2141_s1 + $0x168] sm:$0xff]  ;;  %v1050_v58 = vld [vmem:[%s2141_s1 + $0x170] sm:$0xff] }
  0x1e   : > { %1516 = vmatprep.subr.bf16.mxu1 %v1515_v38  ;;  %v1595_v30 = vpack.c.bf16 %v1057_v27, %v1056_v26  ;;  %v1044_v12 = vld [vmem:[%s2141_s1 + $0x140] sm:$0xff]  ;;  %v558_v61 = vld [vmem:[#allocation2 + $0xa] sm:$0xff]  ;;  %v673_v31 = vld [vmem:[%s2142_s2 + $0x58] sm:$0xff] }
  0x1f   : > { %1478 = vmatpush3.bf16.msra.mxu0 %v1475_v53  ;;  %v1047_v53 = vld [vmem:[%s2141_s1 + $0x158] sm:$0xff]  ;;  %v1048_v55 = vld [vmem:[%s2141_s1 + $0x160] sm:$0xff]  ;;  %v1062_v62 = vld [vmem:[%s2142_s2 + $0xd0] sm:$0xff] }
  0x20   : > { %1480 = vmatprep.subr.bf16.mxu0 %v1479_v60  ;;  %v1064_v1 = vld [vmem:[%s2142_s2 + $0xe0] sm:$0xff]  ;;  %v1066_v4 = vld [vmem:[%s2142_s2 + $0xf0] sm:$0xff]  ;;  %v663_v9 = vld [vmem:[%s2142_s2 + $0x8] sm:$0xff] }
  0x21   : > { %1518 = vmatpush3.bf16.msra.mxu1 %v1515_v38  ;;  %v1061_v38 = vld [vmem:[%s2142_s2 + $0xc8] sm:$0xff]  ;;  %v1072_v46 = vld [vmem:[%s2142_s2 + $0x120] sm:$0xff] }
  0x22   : > { %1520 = vmatprep.subr.bf16.mxu1 %v1519_v44  ;;  %v1603_v42 = vpack.c.bf16 %v1061_v38, %v1060_v37  ;;  %v667_v23 = vld [vmem:[%s2142_s2 + $0x28] sm:$0xff]  ;;  %v677_v37 = vld [vmem:[%s2142_s2 + $0x78] sm:$0xff] }
  0x23   : > { %1482 = vmatpush3.bf16.msra.mxu0 %v1479_v60  ;;  %v1583_v60 = vpack.c.bf16 %v1051_v59, %v1050_v58  ;;  %v671_v29 = vld [vmem:[%s2142_s2 + $0x48] sm:$0xff] }
  0x24   : > { %1484 = vmatprep.subr.bf16.mxu0 %v1483_v2  ;;  %v675_v34 = vld [vmem:[%s2142_s2 + $0x68] sm:$0xff] }
  0x25   : > { %1522 = vmatpush3.bf16.msra.mxu1 %v1519_v44  ;;  %v557_v44 = vld [vmem:[#allocation2 + $0x2] sm:$0xff] }
  0x26   : > { %1524 = vmatprep.subr.bf16.mxu1 %v1523_v50  ;;  %v1069_v40 = vld [vmem:[%s2142_s2 + $0x108] sm:$0xff] }
  0x27   : > { %1486 = vmatpush3.bf16.msra.mxu0 %v1483_v2  ;;  %v1065_v2 = vld [vmem:[%s2142_s2 + $0xe8] sm:$0xff] }
  0x28   : > { %1282 = vmatmul.mubr.f32.vlgmr.msra.gmra.mrb[0].mxu1 %v389_v54  ;;  %1488 = vmatprep.subr.bf16.mxu0 %v1487_v8  ;;  %v1575_v54 = vpack.c.bf16 %v1047_v53, %v1046_v52  ;;  %v1611_v3 = vpack.c.bf16 %v1065_v2, %v1064_v1  ;;  %v1077_v52 = vld [vmem:[%s2142_s2 + $0x148] sm:$0xff]  ;;  %v1084_v2 = vld [vmem:[%s2145_s5] ss:$0 sm:$0xff] }
  0x29   : > { %1526 = vmatpush3.bf16.msra.mxu1 %v1523_v50  ;;  %1316 = vmatprep.mubr.f32.mxu1 %v364_v14  ;;  %v382_v14 = vld [vmem:[%s2141_s1 + $0x50] sm:$0xff]  ;;  %v1567_v50 = vpack.c.bf16 %v1043_v49, %v1042_v48  ;;  %v1081_v58 = vld [vmem:[%s2142_s2 + $0x168] sm:$0xff] }
  0x2a   : > { %1528 = vmatprep.subr.bf16.mxu1 %v1527_v57  ;;  %v1543_v22 = vpack.c.bf16 %v383_v16, %v382_v14  ;;  %v664_v14 = vld [vmem:[%s2142_s2 + $0x10] sm:$0xff]  ;;  %v665_v16 = vld [vmem:[%s2142_s2 + $0x18] sm:$0xff] }
  0x2b   : > { %1490 = vmatpush3.bf16.msra.mxu0 %v1487_v8  ;;  %v662_v8 = vld [vmem:[%s2142_s2] sm:$0xff]  ;;  %v1623_v21 = vpack.c.bf16 %v665_v16, %v664_v14 }
  0x2c   : > { %1588 = vmatprep.subr.bf16.mxu0 %v1587_v18  ;;  %v1619_v10 = vpack.c.bf16 %v663_v9, %v662_v8 }
  0x2d   : > { %1530 = vmatpush3.bf16.msra.mxu1 %v1527_v57  ;;  %v1579_v57 = vpack.c.bf16 %v1049_v56, %v1048_v55  ;;  %v1079_v55 = vld [vmem:[%s2142_s2 + $0x158] sm:$0xff] }
  0x2e   : > { %1532 = vmatprep.subr.bf16.mxu1 %v1531_v63  ;;  %1247 = vmatmul.mubr.f32.vlgmr.msra.gmra.mrb[0].mxu0 %v286_v24  ;;  %v668_v24 = vld [vmem:[%s2142_s2 + $0x30] sm:$0xff] }
  0x2f   : > { %1590 = vmatpush3.bf16.msra.mxu0 %v1587_v18 }
  0x30   : > { %1592 = vmatprep.subr.bf16.mxu0 %v1591_v25 }
  0x31   : > { %1534 = vmatpush3.bf16.msra.mxu1 %v1531_v63  ;;  %v1063_v63 = vld [vmem:[%s2142_s2 + $0xd8] sm:$0xff] }
  0x32   : > { %1536 = vmatprep.subr.bf16.mxu1 %v1535_v5  ;;  %v1607_v0 = vpack.c.bf16 %v1063_v63, %v1062_v62 }
  0x33   : > { %1594 = vmatpush3.bf16.msra.mxu0 %v1591_v25  ;;  %v669_v25 = vld [vmem:[%s2142_s2 + $0x38] sm:$0xff] }
  0x34   : > { %1596 = vmatprep.subr.bf16.mxu0 %v1595_v30  ;;  %v1631_v27 = vpack.c.bf16 %v669_v25, %v668_v24 }
  0x35   : > { %1538 = vmatpush3.bf16.msra.mxu1 %v1535_v5  ;;  %v1067_v5 = vld [vmem:[%s2142_s2 + $0xf8] sm:$0xff] }
  0x36   : > { %1540 = vmatprep.subr.bf16.mxu1 %v1539_v11  ;;  %v1615_v6 = vpack.c.bf16 %v1067_v5, %v1066_v4 }
  0x37   : > { %1598 = vmatpush3.bf16.msra.mxu0 %v1595_v30  ;;  %v672_v30 = vld [vmem:[%s2142_s2 + $0x50] sm:$0xff] }
  0x38   : > { %1600 = vmatprep.subr.bf16.mxu0 %v1599_v36  ;;  %v1639_v32 = vpack.c.bf16 %v673_v31, %v672_v30 }
  0x39   : > { %1542 = vmatpush3.bf16.msra.mxu1 %v1539_v11 }
  0x3a   : > { %1544 = vmatprep.subr.bf16.mxu1 %v1543_v22 }
  0x3b   : > { %1602 = vmatpush3.bf16.msra.mxu0 %v1599_v36  ;;  %v676_v36 = vld [vmem:[%s2142_s2 + $0x70] sm:$0xff] }
  0x3c   : > { %1604 = vmatprep.subr.bf16.mxu0 %v1603_v42  ;;  %v1647_v38 = vpack.c.bf16 %v677_v37, %v676_v36 }
  0x3d   : > { %1546 = vmatpush3.bf16.msra.mxu1 %v1543_v22  ;;  %v666_v22 = vld [vmem:[%s2142_s2 + $0x20] sm:$0xff] }
  0x3e   : > { %1548 = vmatprep.subr.bf16.mxu1 %v1547_v28  ;;  %v1627_v13 = vpack.c.bf16 %v667_v23, %v666_v22 }
  0x3f   : > { %1606 = vmatpush3.bf16.msra.mxu0 %v1603_v42  ;;  %v1070_v42 = vld [vmem:[%s2142_s2 + $0x110] sm:$0xff] }
  0x40   : > { %1608 = vmatprep.subr.bf16.mxu0 %v1607_v0 }
  0x41   : > { %1550 = vmatpush3.bf16.msra.mxu1 %v1547_v28  ;;  %v670_v28 = vld [vmem:[%s2142_s2 + $0x40] sm:$0xff] }
  0x42   : > { %1552 = vmatprep.subr.bf16.mxu1 %v1551_v33  ;;  %v1635_v19 = vpack.c.bf16 %v671_v29, %v670_v28 }
  0x43   : > { %1610 = vmatpush3.bf16.msra.mxu0 %v1607_v0  ;;  %v1019_v0 = vld [vmem:[%s2144_s4] ss:$0 sm:$0xff] }
  0x44   : > { %1612 = vmatprep.subr.bf16.mxu0 %v1611_v3 }
  0x45   : > { %1554 = vmatpush3.bf16.msra.mxu1 %v1551_v33  ;;  %v674_v33 = vld [vmem:[%s2142_s2 + $0x60] sm:$0xff] }
  0x46   : > { %1556 = vmatprep.subr.bf16.mxu1 %v1555_v39  ;;  %v1643_v35 = vpack.c.bf16 %v675_v34, %v674_v33 }
  0x47   : > { %1614 = vmatpush3.bf16.msra.mxu0 %v1611_v3 }
  0x48   : > { %1317 = vmatmul.mubr.f32.vlgmr.msra.gmra.mrb[0].mxu1 %v365_v15  ;;  %v1045_v15 = vld [vmem:[%s2141_s1 + $0x148] sm:$0xff]  ;;  %1616 = vmatprep.subr.bf16.mxu0 %v1615_v6 }
  0x49   : > { %1558 = vmatpush3.bf16.msra.mxu1 %v1555_v39  ;;  %1351 = vmatprep.mubr.f32.mxu1 %v557_v44  ;;  %v1571_v51 = vpack.c.bf16 %v1045_v15, %v1044_v12  ;;  %v1068_v39 = vld [vmem:[%s2142_s2 + $0x100] sm:$0xff]  ;;  %v1075_v12 = vld [vmem:[%s2142_s2 + $0x138] sm:$0xff] }
  0x4a   : > { %1560 = vmatprep.subr.bf16.mxu1 %v1559_v43  ;;  %v1651_v41 = vpack.c.bf16 %v1069_v40, %v1068_v39 }
  0x4b   : > { %1618 = vmatpush3.bf16.msra.mxu0 %v1615_v6 }
  0x4c   : > { %1620 = vmatprep.subr.bf16.mxu0 %v1619_v10 }
  0x4d   : > { %1562 = vmatpush3.bf16.msra.mxu1 %v1559_v43  ;;  %v1071_v43 = vld [vmem:[%s2142_s2 + $0x118] sm:$0xff] }
  0x4e   : > { %1564 = vmatprep.subr.bf16.mxu1 %v1563_v47  ;;  %v1655_v44 = vpack.c.bf16 %v1071_v43, %v1070_v42 }
  0x51   : > { %1566 = vmatpush3.bf16.msra.mxu1 %v1563_v47  ;;  %v1073_v47 = vld [vmem:[%s2142_s2 + $0x128] sm:$0xff] }
  0x52   : > { %1568 = vmatprep.subr.bf16.mxu1 %v1567_v50  ;;  %v1659_v49 = vpack.c.bf16 %v1073_v47, %v1072_v46 }
  0x55   : > { %1570 = vmatpush3.bf16.msra.mxu1 %v1567_v50  ;;  %v1074_v50 = vld [vmem:[%s2142_s2 + $0x130] sm:$0xff] }
  0x56   : > { %1572 = vmatprep.subr.bf16.mxu1 %v1571_v51  ;;  %v1663_v15 = vpack.c.bf16 %v1075_v12, %v1074_v50 }
  0x59   : > { %1574 = vmatpush3.bf16.msra.mxu1 %v1571_v51  ;;  %v1076_v51 = vld [vmem:[%s2142_s2 + $0x140] sm:$0xff] }
  0x5a   : > { %1576 = vmatprep.subr.bf16.mxu1 %v1575_v54  ;;  %v1667_v53 = vpack.c.bf16 %v1077_v52, %v1076_v51 }
  0x5d   : > { %1578 = vmatpush3.bf16.msra.mxu1 %v1575_v54  ;;  %v1078_v54 = vld [vmem:[%s2142_s2 + $0x150] sm:$0xff] }
  0x5e   : > { %1580 = vmatprep.subr.bf16.mxu1 %v1579_v57  ;;  %v1671_v56 = vpack.c.bf16 %v1079_v55, %v1078_v54 }
  0x61   : > { %1582 = vmatpush3.bf16.msra.mxu1 %v1579_v57  ;;  %v1080_v57 = vld [vmem:[%s2142_s2 + $0x160] sm:$0xff] }
  0x62   : > { %1584 = vmatprep.subr.bf16.mxu1 %v1583_v60  ;;  %v1675_v59 = vpack.c.bf16 %v1081_v58, %v1080_v57 }
  0x65   : > { %1586 = vmatpush3.bf16.msra.mxu1 %v1583_v60  ;;  %v1082_v60 = vld [vmem:[%s2142_s2 + $0x170] sm:$0xff] }
  0x68   : > { %1352 = vmatmul.mubr.f32.vlgmr.msra.gmra.mrb[0].mxu1 %v558_v61  ;;  %v1083_v61 = vld [vmem:[%s2142_s2 + $0x178] sm:$0xff] }
  0x69   : > { %v1679_v62 = vpack.c.bf16 %v1083_v61, %v1082_v60 }
 0x13b   : > { %v1353_v11 = vpop.f32.mrb[0].mxu1 }
 0x13c   : > { %v657_v17 = vmax.f32 %v1353_v11, 0.0  ;;  %v642_v18 = vpop.f32.mrb[1].mxu1 }
 0x13d   : > { %v656_v20 = vmax.f32 %v642_v18, 0.0 }
 0x13e   : > { %659 = vst [vmem:[#allocation3 + $0x9] sm:$0xff] %v657_v17 }
 0x13f   : > { %658 = vst [vmem:[#allocation3 + $0x1] sm:$0xff] %v656_v20  ;;  %1386 = vmatprep.mubr.f32.mxu0 %v656_v20 }
 0x140   : > { %1387 = vmatmul.mubr.f32.vlgmr.msra.gmra.mrb[0].mxu0 %v657_v17 }
 0x141   : > { %1622 = vmatpush3.bf16.msra.mxu0 %v1619_v10 }
 0x142   : > { %1624 = vmatprep.subr.bf16.mxu0 %v1623_v21 }
 0x145   : > { %1626 = vmatpush3.bf16.msra.mxu0 %v1623_v21  ;;  %v848_v63 = vld [vmem:[#allocation3 + $0xa] sm:$0xff] }
 0x146   : > { %v660_v26 = vld [vmem:[#allocation3] sm:$0xff]  ;;  %1628 = vmatprep.subr.bf16.mxu0 %v1627_v13  ;;  %v661_v45 = vld [vmem:[#allocation3 + $0x8] sm:$0xff] }
 0x147   : > { %1421 = vmatprep.mubr.f32.mxu0 %v660_v26  ;;  %v847_v48 = vld [vmem:[#allocation3 + $0x2] sm:$0xff] }
 0x149   : > { %1630 = vmatpush3.bf16.msra.mxu0 %v1627_v13 }
 0x14a   : > { %1632 = vmatprep.subr.bf16.mxu0 %v1631_v27 }
 0x14d   : > { %1634 = vmatpush3.bf16.msra.mxu0 %v1631_v27 }
 0x14e   : > { %1636 = vmatprep.subr.bf16.mxu0 %v1635_v19 }
 0x151   : > { %1638 = vmatpush3.bf16.msra.mxu0 %v1635_v19 }
 0x152   : > { %1640 = vmatprep.subr.bf16.mxu0 %v1639_v32 }
 0x155   : > { %1642 = vmatpush3.bf16.msra.mxu0 %v1639_v32 }
 0x156   : > { %1644 = vmatprep.subr.bf16.mxu0 %v1643_v35 }
 0x159   : > { %1646 = vmatpush3.bf16.msra.mxu0 %v1643_v35 }
 0x15a   : > { %1648 = vmatprep.subr.bf16.mxu0 %v1647_v38 }
 0x15d   : > { %1650 = vmatpush3.bf16.msra.mxu0 %v1647_v38 }
 0x15e   : > { %1652 = vmatprep.subr.bf16.mxu0 %v1651_v41 }
 0x160   : > { %1422 = vmatmul.mubr.f32.vlgmr.msra.gmra.mrb[0].mxu0 %v661_v45 }
 0x161   : > { %1654 = vmatpush3.bf16.msra.mxu0 %v1651_v41  ;;  %1456 = vmatprep.mubr.f32.mxu0 %v847_v48 }
 0x162   : > { %1656 = vmatprep.subr.bf16.mxu0 %v1655_v44 }
 0x165   : > { %1658 = vmatpush3.bf16.msra.mxu0 %v1655_v44 }
 0x166   : > { %1660 = vmatprep.subr.bf16.mxu0 %v1659_v49 }
 0x169   : > { %1662 = vmatpush3.bf16.msra.mxu0 %v1659_v49 }
 0x16a   : > { %1664 = vmatprep.subr.bf16.mxu0 %v1663_v15 }
 0x16d   : > { %1666 = vmatpush3.bf16.msra.mxu0 %v1663_v15 }
 0x16e   : > { %1668 = vmatprep.subr.bf16.mxu0 %v1667_v53 }
 0x171   : > { %1670 = vmatpush3.bf16.msra.mxu0 %v1667_v53 }
 0x172   : > { %1672 = vmatprep.subr.bf16.mxu0 %v1671_v56 }
 0x175   : > { %1674 = vmatpush3.bf16.msra.mxu0 %v1671_v56 }
 0x176   : > { %1676 = vmatprep.subr.bf16.mxu0 %v1675_v59 }
 0x179   : > { %1678 = vmatpush3.bf16.msra.mxu0 %v1675_v59 }
 0x17a   : > { %1680 = vmatprep.subr.bf16.mxu0 %v1679_v62 }
 0x17d   : > { %1682 = vmatpush3.bf16.msra.mxu0 %v1679_v62 }
 0x180   : > { %1457 = vmatmul.mubr.f32.vlgmr.msra.gmra.mrb[0].mxu0 %v848_v63 }
 0x253   : > { %v1458_v1 = vpop.f32.mrb[0].mxu0 }
 0x254   : > { %v1683_v3 = vadd.f32 %v1458_v1, %v1019_v0  ;;  %v932_v4 = vpop.f32.mrb[1].mxu0 }
 0x255   : > { %v1685_v5 = vadd.f32 %v1019_v0, %v932_v4 }
 0x256   : > { %v1684_v6 = vadd.f32 %v1683_v3, %v1084_v2 }
 0x257   : > { %v1686_v7 = vadd.f32 %v1685_v5, %v1084_v2 }
 0x258   : > { %955 = vst [vmem:[%s251_s14 + $0x8] sm:$0xff] %v1684_v6 }
 0x259   : > { %954 = vst [vmem:[%s251_s14] sm:$0xff] %v1686_v7 }
 0x25a PF: > { %s16_s21 = sadd.s32 1, %s1713_s21  }
 0x25b   : > { %p13_p4 = scmp.ge.s32.totalorder %s16_s21, 4  }
 0x25d   :  { %15 = sbr.rel (!%p13_p4) target bundleno = 1 (0x1), region = 78 }

</bundles_post_ra>
